<compile_context>
chip_gen: v7x
topology: tpu7x:2x2x1
jax: 0.10.0
libtpu: 0.0.40
codegen_flags: <defaults>
</compile_context>

<pallas_src>
import jax
import jax.numpy as jnp
import numpy as np
from jax.experimental import pallas as pl
from jax.experimental.pallas import tpu as pltpu

LAYER_NORM_EPS = 1e-12


# ---------------------------------------------------------------------------
# In-kernel LayerNorm (f32 math, single pass over the tile)
# ---------------------------------------------------------------------------
def _layernorm(x, gamma, beta):
    mean = jnp.mean(x, axis=-1, keepdims=True)
    mean_sq = jnp.mean(x * x, axis=-1, keepdims=True)
    var = jnp.maximum(mean_sq - mean * mean, 0.0)
    inv = jax.lax.rsqrt(var + LAYER_NORM_EPS)
    return (x - mean) * inv * gamma + beta


# ---------------------------------------------------------------------------
# Kernels (one grid step = one batch element, full row-slab tiles)
# ---------------------------------------------------------------------------
def _fused_query_token_kernel(q_ref, w_ref, p_ref, g_ref, b_ref, out_ref):
    # q_ref: (1, Q, H)  w_ref/p_ref: (1, S, H)  out_ref: (1, Q+S, H)
    Q = q_ref.shape[1]
    g = g_ref[...].astype(jnp.float32)
    b = b_ref[...].astype(jnp.float32)
    # Query half of the output (rows [0, Q)). Sublane-masked store if Q % 8 != 0.
    q = q_ref[...].astype(jnp.float32)
    out_ref[:, :Q, :] = _layernorm(q, g, b).astype(out_ref.dtype)
    # Token half of the output (rows [Q, Q+S)).
    x = w_ref[...].astype(jnp.float32) + p_ref[...].astype(jnp.float32)
    out_ref[:, Q:, :] = _layernorm(x, g, b).astype(out_ref.dtype)


def _token_kernel(w_ref, p_ref, g_ref, b_ref, out_ref):
    # (word + pos) followed by LayerNorm, no query rows.
    g = g_ref[...].astype(jnp.float32)
    b = b_ref[...].astype(jnp.float32)
    x = w_ref[...].astype(jnp.float32) + p_ref[...].astype(jnp.float32)
    out_ref[...] = _layernorm(x, g, b).astype(out_ref.dtype)


def _ln_kernel(x_ref, g_ref, b_ref, out_ref):
    # LayerNorm only (query-only path).
    g = g_ref[...].astype(jnp.float32)
    b = b_ref[...].astype(jnp.float32)
    out_ref[...] = _layernorm(x_ref[...].astype(jnp.float32), g, b).astype(out_ref.dtype)


# ---------------------------------------------------------------------------
# Module forward
# ---------------------------------------------------------------------------
def bert_embeddings_forward(params, input_ids=None, position_ids=None,
                            query_embeds=None, past_key_values_length=0,
                            out_dtype=None):
    word_table = params["word_embeddings"]
    pos_table = params["position_embeddings"]
    gamma = params["ln_gamma"]
    beta = params["ln_beta"]
    H = word_table.shape[-1]
    g3 = gamma.reshape(1, 1, H)
    b3 = beta.reshape(1, 1, H)

    cparams = pltpu.CompilerParams(dimension_semantics=("parallel",))

    # ---------------- query-only path ----------------
    if input_ids is None:
        q = query_embeds
        B, Q, _ = q.shape
        odt = q.dtype if out_dtype is None else out_dtype
        return pl.pallas_call(
            _ln_kernel,
            out_shape=jax.ShapeDtypeStruct((B, Q, H), odt),
            grid=(B,),
            in_specs=[
                pl.BlockSpec((1, Q, H), lambda bdx: (bdx, 0, 0)),
                pl.BlockSpec((1, 1, H), lambda bdx: (0, 0, 0)),
                pl.BlockSpec((1, 1, H), lambda bdx: (0, 0, 0)),
            ],
            out_specs=pl.BlockSpec((1, Q, H), lambda bdx: (bdx, 0, 0)),
            compiler_params=cparams,
        )(q, g3, b3)

    B, S = input_ids.shape
    input_ids = input_ids.astype(jnp.int32)

    # Word-embedding gather via XLA (review Option A) so the LN kernel can use
    # big (S, H) tiles instead of 1-row blocks.
    word_rows = jnp.take(word_table, input_ids, axis=0)              # (B, S, H)

    # Positional rows: contiguous table slice when position_ids is None
    # (past_key_values_length is a static Python int, as in the torch module).
    if position_ids is None:
        pos_rows = pos_table[past_key_values_length:past_key_values_length + S]
        pos_rows = pos_rows.reshape(1, S, H)                         # shared across batch
    else:
        pos_rows = jnp.take(pos_table, position_ids.astype(jnp.int32), axis=0)
        if pos_rows.ndim == 2:                                       # (S,) ids
            pos_rows = pos_rows.reshape(1, S, H)
    pos_batched = pos_rows.shape[0] != 1
    pos_index = (lambda bdx: (bdx, 0, 0)) if pos_batched else (lambda bdx: (0, 0, 0))

    # ---------------- tokens (+ optional query) ----------------
    if query_embeds is not None:
        q = query_embeds
        Q = q.shape[1]
        odt = jnp.result_type(q.dtype, word_table.dtype) if out_dtype is None else out_dtype
        return pl.pallas_call(
            _fused_query_token_kernel,
            out_shape=jax.ShapeDtypeStruct((B, Q + S, H), odt),
            grid=(B,),
            in_specs=[
                pl.BlockSpec((1, Q, H), lambda bdx: (bdx, 0, 0)),    # query
                pl.BlockSpec((1, S, H), lambda bdx: (bdx, 0, 0)),    # gathered word rows
                pl.BlockSpec((1, S, H), pos_index),                  # positional rows
                pl.BlockSpec((1, 1, H), lambda bdx: (0, 0, 0)),      # gamma
                pl.BlockSpec((1, 1, H), lambda bdx: (0, 0, 0)),      # beta
            ],
            out_specs=pl.BlockSpec((1, Q + S, H), lambda bdx: (bdx, 0, 0)),
            compiler_params=cparams,
        )(q, word_rows, pos_rows, g3, b3)
    else:
        odt = word_table.dtype if out_dtype is None else out_dtype
        return pl.pallas_call(
            _token_kernel,
            out_shape=jax.ShapeDtypeStruct((B, S, H), odt),
            grid=(B,),
            in_specs=[
                pl.BlockSpec((1, S, H), lambda bdx: (bdx, 0, 0)),
                pl.BlockSpec((1, S, H), pos_index),
                pl.BlockSpec((1, 1, H), lambda bdx: (0, 0, 0)),
                pl.BlockSpec((1, 1, H), lambda bdx: (0, 0, 0)),
            ],
            out_specs=pl.BlockSpec((1, S, H), lambda bdx: (bdx, 0, 0)),
            compiler_params=cparams,
        )(word_rows, pos_rows, g3, b3)

    # TODO(synk): training-mode Dropout (hidden_dropout_prob) is identity in
    # eval; a train variant would use pltpu.prng_seed / pltpu.stateful_bernoulli.


# ---------------------------------------------------------------------------
# Reference (plain JAX) for validation
# ---------------------------------------------------------------------------
def _ref_ln(x, gamma, beta):
    mean = x.mean(-1, keepdims=True)
    var = ((x - mean) ** 2).mean(-1, keepdims=True)
    return (x - mean) / jnp.sqrt(var + LAYER_NORM_EPS) * gamma + beta


def reference_forward(params, input_ids=None, position_ids=None, query_embeds=None,
                      past_key_values_length=0):
    if input_ids is not None:
        S = input_ids.shape[1]
        if position_ids is None:
            position_ids = jnp.arange(past_key_values_length,
                                      past_key_values_length + S, dtype=jnp.int32)[None, :]
        emb = (params["word_embeddings"][input_ids]
               + params["position_embeddings"][position_ids])
        if query_embeds is not None:
            emb = jnp.concatenate([query_embeds, emb], axis=1)
    else:
        emb = query_embeds
    return _ref_ln(emb, params["ln_gamma"], params["ln_beta"])


if __name__ == "__main__":
    # Small synthetic config (real qformer: vocab~30k, H=768, Q=32)
    vocab_size = 64
    hidden_size = 32
    max_position_embeddings = 16
    pad_token_id = 0

    B, S, Q = 2, 8, 8

    key = jax.random.PRNGKey(0)
    k_word, k_pos, k_ids, k_query = jax.random.split(key, 4)

    word_emb = 0.02 * jax.random.normal(k_word, (vocab_size, hidden_size), jnp.float32)
    word_emb = word_emb.at[pad_token_id].set(0.0)  # padding_idx row is zero
    pos_emb = 0.02 * jax.random.normal(k_pos, (max_position_embeddings, hidden_size),
                                       jnp.float32)
    ln_gamma = 1.0 + 0.01 * jnp.arange(hidden_size, dtype=jnp.float32)
    ln_beta = 0.005 * jnp.arange(hidden_size, dtype=jnp.float32)

    params = {
        "word_embeddings": word_emb,
        "position_embeddings": pos_emb,
        "ln_gamma": ln_gamma,
        "ln_beta": ln_beta,
    }

    input_ids = jax.random.randint(k_ids, (B, S), 0, vocab_size, dtype=jnp.int32)
    query_embeds = jax.random.normal(k_query, (B, Q, hidden_size), jnp.float32)

    # 1) main path: query + tokens, positions from arange
    out = bert_embeddings_forward(params, input_ids=input_ids, query_embeds=query_embeds)
    out = jax.block_until_ready(out)
    ref = reference_forward(params, input_ids=input_ids, query_embeds=query_embeds)
    np.testing.assert_allclose(np.asarray(out), np.asarray(ref), rtol=1e-5, atol=1e-5)

    # 2) tokens only, nonzero past_key_values_length (contiguous pos slice path)
    out2 = bert_embeddings_forward(params, input_ids=input_ids, past_key_values_length=3)
    out2 = jax.block_until_ready(out2)
    ref2 = reference_forward(params, input_ids=input_ids, past_key_values_length=3)
    np.testing.assert_allclose(np.asarray(out2), np.asarray(ref2), rtol=1e-5, atol=1e-5)

    # 3) explicit (non-arange) position_ids -> gathered positional rows
    rev_pos = jnp.broadcast_to(jnp.arange(S - 1, -1, -1, dtype=jnp.int32)[None, :], (B, S))
    out3 = bert_embeddings_forward(params, input_ids=input_ids, position_ids=rev_pos,
                                   query_embeds=query_embeds)
    out3 = jax.block_until_ready(out3)
    ref3 = reference_forward(params, input_ids=input_ids, position_ids=rev_pos,
                             query_embeds=query_embeds)
    np.testing.assert_allclose(np.asarray(out3), np.asarray(ref3), rtol=1e-5, atol=1e-5)

    # 4) query only
    out4 = bert_embeddings_forward(params, query_embeds=query_embeds)
    out4 = jax.block_until_ready(out4)
    ref4 = reference_forward(params, query_embeds=query_embeds)
    np.testing.assert_allclose(np.asarray(out4), np.asarray(ref4), rtol=1e-5, atol=1e-5)

    print("KERNEL_OK")
</pallas_src>

<mosaic_0001>
module attributes {stable_mosaic.version = 11 : i64} {
  func.func @_fused_query_token_kernel(%arg0: i32, %arg1: memref<1x8x32xf32, #tpu.memory_space<vmem>>, %arg2: memref<1x8x32xf32, #tpu.memory_space<vmem>>, %arg3: memref<1x8x32xf32, #tpu.memory_space<vmem>>, %arg4: memref<1x1x32xf32, #tpu.memory_space<vmem>>, %arg5: memref<1x1x32xf32, #tpu.memory_space<vmem>>, %arg6: memref<1x16x32xf32, #tpu.memory_space<vmem>>) attributes {dimension_semantics = [#tpu.dimension_semantics<parallel>], iteration_bounds = array<i64: 2>, scalar_prefetch = 0 : i64, scratch_operands = 0 : i64, tpu.core_type = #tpu.core_type<tc>, window_params = [{transform_indices = @transform_0, window_bounds = array<i64: 1, 8, 32>}, {transform_indices = @transform_1, window_bounds = array<i64: 1, 8, 32>}, {pipeline_mode = #tpu.pipeline_mode<synchronous>, transform_indices = @transform_2, window_bounds = array<i64: 1, 8, 32>}, {pipeline_mode = #tpu.pipeline_mode<synchronous>, transform_indices = @transform_3, window_bounds = array<i64: 1, 1, 32>}, {pipeline_mode = #tpu.pipeline_mode<synchronous>, transform_indices = @transform_4, window_bounds = array<i64: 1, 1, 32>}, {transform_indices = @transform_5, window_bounds = array<i64: 1, 16, 32>}]} {
    %c0 = arith.constant 0 : index
    %c0_0 = arith.constant 0 : index
    %c0_1 = arith.constant 0 : index
    %0 = vector.load %arg4[%c0, %c0_0, %c0_1] : memref<1x1x32xf32, #tpu.memory_space<vmem>>, vector<1x1x32xf32>
    %c0_2 = arith.constant 0 : index
    %c0_3 = arith.constant 0 : index
    %c0_4 = arith.constant 0 : index
    %1 = vector.load %arg5[%c0_2, %c0_3, %c0_4] : memref<1x1x32xf32, #tpu.memory_space<vmem>>, vector<1x1x32xf32>
    %c0_5 = arith.constant 0 : index
    %c0_6 = arith.constant 0 : index
    %c0_7 = arith.constant 0 : index
    %2 = vector.load %arg1[%c0_5, %c0_6, %c0_7] : memref<1x8x32xf32, #tpu.memory_space<vmem>>, vector<1x8x32xf32>
    %cst = arith.constant dense<0.000000e+00> : vector<1x8xf32>
    %3 = vector.multi_reduction <add>, %2, %cst [2] : vector<1x8x32xf32> to vector<1x8xf32>
    %4 = vector.shape_cast %3 : vector<1x8xf32> to vector<1x8x1xf32>
    %cst_8 = arith.constant 3.200000e+01 : f32
    %5 = vector.broadcast %cst_8 : f32 to vector<1x8x1xf32>
    %6 = arith.divf %4, %5 : vector<1x8x1xf32>
    %7 = arith.mulf %2, %2 : vector<1x8x32xf32>
    %cst_9 = arith.constant dense<0.000000e+00> : vector<1x8xf32>
    %8 = vector.multi_reduction <add>, %7, %cst_9 [2] : vector<1x8x32xf32> to vector<1x8xf32>
    %9 = vector.shape_cast %8 : vector<1x8xf32> to vector<1x8x1xf32>
    %cst_10 = arith.constant 3.200000e+01 : f32
    %10 = vector.broadcast %cst_10 : f32 to vector<1x8x1xf32>
    %11 = arith.divf %9, %10 : vector<1x8x1xf32>
    %12 = arith.mulf %6, %6 : vector<1x8x1xf32>
    %13 = arith.subf %11, %12 : vector<1x8x1xf32>
    %cst_11 = arith.constant 0.000000e+00 : f32
    %14 = vector.broadcast %cst_11 : f32 to vector<1x8x1xf32>
    %15 = arith.maximumf %13, %14 : vector<1x8x1xf32>
    %cst_12 = arith.constant 9.99999996E-13 : f32
    %16 = vector.broadcast %cst_12 : f32 to vector<1x8x1xf32>
    %17 = arith.addf %15, %16 : vector<1x8x1xf32>
    %18 = math.rsqrt %17 : vector<1x8x1xf32>
    %19 = vector.broadcast %6 : vector<1x8x1xf32> to vector<1x8x32xf32>
    %20 = arith.subf %2, %19 : vector<1x8x32xf32>
    %21 = vector.broadcast %18 : vector<1x8x1xf32> to vector<1x8x32xf32>
    %22 = arith.mulf %20, %21 : vector<1x8x32xf32>
    %23 = vector.broadcast %0 : vector<1x1x32xf32> to vector<1x8x32xf32>
    %24 = arith.mulf %22, %23 : vector<1x8x32xf32>
    %25 = vector.broadcast %1 : vector<1x1x32xf32> to vector<1x8x32xf32>
    %26 = arith.addf %24, %25 : vector<1x8x32xf32>
    %c0_13 = arith.constant 0 : index
    %c0_14 = arith.constant 0 : index
    %c0_15 = arith.constant 0 : index
    %27 = vector.load %arg6[%c0_13, %c0_14, %c0_15] : memref<1x16x32xf32, #tpu.memory_space<vmem>>, vector<1x8x32xf32>
    tpu.vector_store %arg6[%c0_13, %c0_14, %c0_15], %26 {strides = array<i32>} : memref<1x16x32xf32, #tpu.memory_space<vmem>>, vector<1x8x32xf32>,
    %c0_16 = arith.constant 0 : index
    %c0_17 = arith.constant 0 : index
    %c0_18 = arith.constant 0 : index
    %28 = vector.load %arg2[%c0_16, %c0_17, %c0_18] : memref<1x8x32xf32, #tpu.memory_space<vmem>>, vector<1x8x32xf32>
    %c0_19 = arith.constant 0 : index
    %c0_20 = arith.constant 0 : index
    %c0_21 = arith.constant 0 : index
    %29 = vector.load %arg3[%c0_19, %c0_20, %c0_21] : memref<1x8x32xf32, #tpu.memory_space<vmem>>, vector<1x8x32xf32>
    %30 = arith.addf %28, %29 : vector<1x8x32xf32>
    %cst_22 = arith.constant dense<0.000000e+00> : vector<1x8xf32>
    %31 = vector.multi_reduction <add>, %30, %cst_22 [2] : vector<1x8x32xf32> to vector<1x8xf32>
    %32 = vector.shape_cast %31 : vector<1x8xf32> to vector<1x8x1xf32>
    %cst_23 = arith.constant 3.200000e+01 : f32
    %33 = vector.broadcast %cst_23 : f32 to vector<1x8x1xf32>
    %34 = arith.divf %32, %33 : vector<1x8x1xf32>
    %35 = arith.mulf %30, %30 : vector<1x8x32xf32>
    %cst_24 = arith.constant dense<0.000000e+00> : vector<1x8xf32>
    %36 = vector.multi_reduction <add>, %35, %cst_24 [2] : vector<1x8x32xf32> to vector<1x8xf32>
    %37 = vector.shape_cast %36 : vector<1x8xf32> to vector<1x8x1xf32>
    %cst_25 = arith.constant 3.200000e+01 : f32
    %38 = vector.broadcast %cst_25 : f32 to vector<1x8x1xf32>
    %39 = arith.divf %37, %38 : vector<1x8x1xf32>
    %40 = arith.mulf %34, %34 : vector<1x8x1xf32>
    %41 = arith.subf %39, %40 : vector<1x8x1xf32>
    %cst_26 = arith.constant 0.000000e+00 : f32
    %42 = vector.broadcast %cst_26 : f32 to vector<1x8x1xf32>
    %43 = arith.maximumf %41, %42 : vector<1x8x1xf32>
    %cst_27 = arith.constant 9.99999996E-13 : f32
    %44 = vector.broadcast %cst_27 : f32 to vector<1x8x1xf32>
    %45 = arith.addf %43, %44 : vector<1x8x1xf32>
    %46 = math.rsqrt %45 : vector<1x8x1xf32>
    %47 = vector.broadcast %34 : vector<1x8x1xf32> to vector<1x8x32xf32>
    %48 = arith.subf %30, %47 : vector<1x8x32xf32>
    %49 = vector.broadcast %46 : vector<1x8x1xf32> to vector<1x8x32xf32>
    %50 = arith.mulf %48, %49 : vector<1x8x32xf32>
    %51 = vector.broadcast %0 : vector<1x1x32xf32> to vector<1x8x32xf32>
    %52 = arith.mulf %50, %51 : vector<1x8x32xf32>
    %53 = vector.broadcast %1 : vector<1x1x32xf32> to vector<1x8x32xf32>
    %54 = arith.addf %52, %53 : vector<1x8x32xf32>
    %c0_28 = arith.constant 0 : index
    %c8 = arith.constant 8 : index
    %c0_29 = arith.constant 0 : index
    %55 = vector.load %arg6[%c0_28, %c8, %c0_29] : memref<1x16x32xf32, #tpu.memory_space<vmem>>, vector<1x8x32xf32>
    tpu.vector_store %arg6[%c0_28, %c8, %c0_29], %54 {strides = array<i32>} : memref<1x16x32xf32, #tpu.memory_space<vmem>>, vector<1x8x32xf32>,
    return
  }
  func.func @transform_0(%arg0: i32) -> (i32, i32, i32) {
    %c0_i32 = arith.constant 0 : i32
    %c0_i32_0 = arith.constant 0 : i32
    %c0_i32_1 = arith.constant 0 : i32
    return %arg0, %c0_i32, %c0_i32_0 : i32, i32, i32
  }
  func.func @transform_1(%arg0: i32) -> (i32, i32, i32) {
    %c0_i32 = arith.constant 0 : i32
    %c0_i32_0 = arith.constant 0 : i32
    %c0_i32_1 = arith.constant 0 : i32
    return %arg0, %c0_i32, %c0_i32_0 : i32, i32, i32
  }
  func.func @transform_2(%arg0: i32) -> (i32, i32, i32) {
    %c0_i32 = arith.constant 0 : i32
    %c0_i32_0 = arith.constant 0 : i32
    %c0_i32_1 = arith.constant 0 : i32
    %c0_i32_2 = arith.constant 0 : i32
    return %c0_i32, %c0_i32_0, %c0_i32_1 : i32, i32, i32
  }
  func.func @transform_3(%arg0: i32) -> (i32, i32, i32) {
    %c0_i32 = arith.constant 0 : i32
    %c0_i32_0 = arith.constant 0 : i32
    %c0_i32_1 = arith.constant 0 : i32
    %c0_i32_2 = arith.constant 0 : i32
    return %c0_i32, %c0_i32_0, %c0_i32_1 : i32, i32, i32
  }
  func.func @transform_4(%arg0: i32) -> (i32, i32, i32) {
    %c0_i32 = arith.constant 0 : i32
    %c0_i32_0 = arith.constant 0 : i32
    %c0_i32_1 = arith.constant 0 : i32
    %c0_i32_2 = arith.constant 0 : i32
    return %c0_i32, %c0_i32_0, %c0_i32_1 : i32, i32, i32
  }
  func.func @transform_5(%arg0: i32) -> (i32, i32, i32) {
    %c0_i32 = arith.constant 0 : i32
    %c0_i32_0 = arith.constant 0 : i32
    %c0_i32_1 = arith.constant 0 : i32
    return %arg0, %c0_i32, %c0_i32_0 : i32, i32, i32
  }
}

</mosaic_0001>

<bundles_post_ra>
// kernel: tpu_custom_call.1
= control target key start
LH: loop header
LB: loop body
LE: loop exit
PB: predicated region body
PF: predicated region fallthrough
CT: control target
= control target key end

     0   :  { %s1005_s0 = inlined_call_operand.hbm [shape: f32[2,8,32], index: 0, kind: input, shape index: {}]   ;;  %s1006_s1 = inlined_call_operand.hbm [shape: f32[2,8,32], index: 1, kind: input, shape index: {}]   ;;  %s1007_s2 = inlined_call_operand.hbm [shape: f32[1,8,32], index: 2, kind: input, shape index: {}]   ;;  %s1008_s3 = inlined_call_operand.vmem [shape: f32[1,1,32], index: 3, kind: input, shape index: {}]   ;;  %s1009_s4 = inlined_call_operand.vmem [shape: f32[1,1,32], index: 4, kind: input, shape index: {}]   ;;  %s1010_s5 = inlined_call_operand.hbm [shape: f32[2,16,32], index: 5, kind: output, shape index: {}]  }
   0x1   :  { %1015 = sst [smem:[#allocation14_spill]] %s1007_s2 }
   0x2   :  { %10 = vsyncpa [#allocation3], 0 }
   0x3   :  { %12 = vsyncpa [#allocation3 + $0x1], 0 }
   0x4   :  { %13 = vsyncpa [#allocation6], 0 }
   0x5   :  { %15 = vsyncpa [#allocation6 + $0x1], 0 }
   0x6   :  { %16 = vsyncpa [#allocation4], 0 }
   0x7   :  { %18 = vsyncpa [#allocation4 + $0x1], 0  ;;  %s755_s18 = smov 0   ;;  %s757_s19 = smov 0  }
   0x8   :  { %s759_s20 = smov 0   ;;  %s761_s21 = smov 0  }
   0x9 LB: > { %s776_s22 = sadd.s32 4294967295, %s717_s21   ;;  %s466_s23 = sadd.s32 4294967294, %s717_s21   ;;  %s717_s21 = sphi %s761_s21, %s1040_s21   ;;  %s713_s20 = sphi %s759_s20, %s1039_s20   ;;  %s709_s19 = sphi %s757_s19, %s1038_s19   ;;  %s705_s18 = sphi %s755_s18, %s1037_s18  }
   0xa   : > { %p44_p0 = scmp.ne.s32.totalorder %s709_s19, %s705_s18  ;;  %p1011_p1 = scmp.eq.s32.totalorder %s776_s22, 0 }
   0xb   : > { %p163_p3 = scmp.eq.s32.totalorder %s466_s23, 1  ;;  %p467_p5 = scmp.ge.s32.totalorder %s717_s21, 1 }
   0xc   : > { %p785_p4 = por %p1011_p1, %p44_p0  ;;  %p170_p7 = scmp.lt.s32.totalorder %s717_s21, 3 }
   0xd   : > { %p790_p6 = por %p163_p3, %p44_p0  ;;  %s719_s27 = smov [#allocation7]  }
   0xe   : > { %s1016_s24 = scalar_select %p785_p4, 1, 0 }
   0xf   : > { %s1017_s25 = scalar_select %p790_p6, 1, 0 }
  0x10   : > { %p795_p8 = pnand %p467_p5, %p170_p7  ;;  %s183_s28 = sshll.u32 %s719_s27, 4  ;;  %s184_s28 = int_to_ptr.vmem [resolvable:$true] %s183_s28 }
  0x11   : > { %s803_s29 = sadd.s32 1, %s717_s21   ;;  %s31_s8 = sadd.s32 1, %s713_s20 }
  0x12   : > { %s1018_s26 = scalar_select %p795_p8, 1, 0 }
  0x13   : > { %p497_p10 = pneg %p795_p8  ;;  %s28_s6 = ssub.s32 %s717_s21, %s803_s29 }
  0x14   : > { %p813_p12 = scmp.eq.s32.totalorder %s28_s6, 0  ;;  %s1021_s2 = sld [smem:[#allocation14_spill]] }
  0x15   : > { %p807_p11 = pnand %p497_p10, %p1011_p1 }
  0x16   : > { %s1020_s7 = scalar_select %p813_p12, 1, 0 }
  0x17   : > { %p557_p3 = pneg %p807_p11 }
  0x1a   : > { %s555_s11 = scalar_lea.hbm %s1021_s2, 128 }
  0x1b   : > { %p556_p0 = scmp.ne.s32.totalorder %s1021_s2, %s555_s11  ;;  %p562_p10 = scmp.lt.u32.totalorder %s555_s11, %s1021_s2 }
  0x1d   : > { %p558_p5 = pnand %p557_p3, %p556_p0 }
  0x1f   : > { %p559_p7 = pneg %p558_p5 }
  0x21   : > { %p564_p9 = pnand %p562_p10, %p559_p7 }
  0x23   : > { %567 = shalt.err (!%p564_p9)
}
  0x24   : > { %s568_s16 = scalar_lea.vmem %s184_s28, 128  ;;  %p576_p6 = scmp.lt.s32.totalorder %s184_s28, %s184_s28 }
  0x25   : > { %p569_p1 = scmp.ne.s32.totalorder %s184_s28, %s568_s16  ;;  %p577_p4 = scmp.lt.s32.totalorder %s568_s16, %s568_s16 }
  0x27   : > { %p571_p2 = pnand %p569_p1, %p557_p3  ;;  %p578_p8 = por %p577_p4, %p576_p6 }
  0x29   : > { %p572_p13 = pneg %p571_p2 }
  0x2b   : > { %p579_p12 = pnand %p578_p8, %p572_p13 }
  0x2d   : > { %582 = shalt.err (!%p579_p12)
}
  0x2e   : > { %500 = dma.hbm_to_vmem [thread:$0]  (!%p807_p11), %s1021_s2, 128, %s184_s28, [#allocation6]  }
  0x2f   : > { %p1022_p1 = scmp.ne.s32.totalorder %s1020_s7, 0  ;;  %p39_p2 = scmp.eq.s32.totalorder %s717_s21, 0 }
  0x30   : > { %p1024_p4 = scmp.ne.s32.totalorder %s713_s20, %s709_s19  ;;  %p1025_p6 = scmp.eq.s32.totalorder %s776_s22, 1 }
  0x31   : > { %s839_s27 = scalar_select %p1022_p1, %s713_s20, %s31_s8  }
  0x32   : > { %p847_p8 = por %p1025_p6, %p1024_p4  ;;  %p513_p9 = scmp.lt.s32.totalorder %s717_s21, 2 }
  0x33   : > { %1023 = sst [smem:[#allocation13_spill]] %s839_s27  ;;  %s200_s6 = sand.u32 1, %s713_s20  }
  0x34   : > { %s1026_s30 = scalar_select %p847_p8, 1, 0 }
  0x35   : > { %p1027_p12 = pmov %p1024_p4  ;;  %s856_s9 = sshll.u32 %s200_s6, 3 }
  0x36   : > { %s471_s10 = sshll.u32 %s717_s21, 7  ;;  %s204_s8 = scalar_lea.vmem [#allocation2], %s856_s9 }
  0x37   : > { %p40_p13 = por %p39_p2, %p1027_p12  ;;  %s862_s7 = scalar_lea.hbm %s1005_s0, %s471_s10 }
  0x38   : > { %s211_s12 = sshll.u32 %s204_s8, 4  ;;  %s874_s16 = scalar_lea.hbm %s1006_s1, %s471_s10  ;;  %s869_s12 = int_to_ptr.vmem [resolvable:$true] %s211_s12 }
  0x39   : > { %p865_p11 = pnand %p513_p9, %p40_p13  ;;  %s201_s17 = scalar_lea.sflag [#allocation3], %s200_s6 }
  0x3a   : > { %s583_s23 = scalar_lea.hbm %s862_s7, 128  ;;  %s588_s8 = scalar_lea.hbm %s1005_s0, 256 }
  0x3b   : > { %p584_p0 = scmp.ne.s32.totalorder %s862_s7, %s583_s23  ;;  %p585_p3 = pneg %p865_p11 }
  0x3c   : > { %p589_p10 = scmp.lt.u32.totalorder %s862_s7, %s1005_s0  ;;  %p590_p1 = scmp.lt.u32.totalorder %s588_s8, %s583_s23 }
  0x3d   : > { %p586_p5 = pnand %p585_p3, %p584_p0  ;;  %p592_p4 = scmp.lt.u32.totalorder %s583_s23, %s862_s7 }
  0x3e   : > { %p591_p2 = por %p590_p1, %p589_p10 }
  0x3f   : > { %p587_p7 = pneg %p586_p5 }
  0x40   : > { %p593_p6 = por %p592_p4, %p591_p2 }
  0x42   : > { %p594_p9 = pnand %p593_p6, %p587_p7 }
  0x44   : > { %597 = shalt.err (!%p594_p9)
}
  0x45   : > { %s598_s6 = scalar_lea.vmem %s869_s12, 128  ;;  %s720_s10 = smov [#allocation2]  }
  0x46   : > { %p599_p12 = scmp.ne.s32.totalorder %s869_s12, %s598_s6  ;;  %s603_s14 = sshll.u32 %s720_s10, 4  ;;  %s604_s14 = int_to_ptr.vmem [resolvable:$false] %s603_s14 }
  0x47   : > { %s605_s2 = scalar_lea.vmem %s604_s14, 256  ;;  %p606_p5 = scmp.lt.s32.totalorder %s869_s12, %s604_s14 }
  0x48   : > { %p601_p13 = pnand %p599_p12, %p585_p3  ;;  %p607_p10 = scmp.lt.s32.totalorder %s605_s2, %s598_s6 }
  0x4a   : > { %p602_p0 = pneg %p601_p13  ;;  %p608_p1 = por %p607_p10, %p606_p5 }
  0x4c   : > { %p609_p2 = pnand %p608_p1, %p602_p0 }
  0x4e   : > { %612 = shalt.err (!%p609_p2)
}
  0x4f   : > { %504 = dma.hbm_to_vmem [thread:$0]  (!%p865_p11), %s862_s7, 128, %s869_s12, %s201_s17  }
  0x50   : > { %s218_s27 = sand.u32 1, %s717_s21   ;;  %s222_s15 = scalar_lea.vmem [#allocation5], %s856_s9 }
  0x51   : > { %s229_s23 = sshll.u32 %s222_s15, 4  ;;  %s219_s11 = scalar_lea.sflag [#allocation6], %s218_s27  ;;  %s230_s23 = int_to_ptr.vmem [resolvable:$true] %s229_s23 }
  0x52   : > { %s613_s28 = scalar_lea.hbm %s874_s16, 128  ;;  %s618_s10 = scalar_lea.hbm %s1006_s1, 256 }
  0x53   : > { %p614_p7 = scmp.ne.s32.totalorder %s874_s16, %s613_s28  ;;  %p619_p9 = scmp.lt.u32.totalorder %s874_s16, %s1006_s1 }
  0x54   : > { %p620_p12 = scmp.lt.u32.totalorder %s618_s10, %s613_s28  ;;  %p622_p0 = scmp.lt.u32.totalorder %s613_s28, %s874_s16 }
  0x55   : > { %p616_p4 = pnand %p614_p7, %p585_p3 }
  0x56   : > { %p621_p13 = por %p620_p12, %p619_p9 }
  0x57   : > { %p617_p6 = pneg %p616_p4 }
  0x58   : > { %p623_p5 = por %p622_p0, %p621_p13 }
  0x5a   : > { %p624_p10 = pnand %p623_p5, %p617_p6 }
  0x5c   : > { %627 = shalt.err (!%p624_p10)
}
  0x5d   : > { %s628_s9 = scalar_lea.vmem %s230_s23, 128  ;;  %s721_s7 = smov [#allocation5]  }
  0x5e   : > { %p629_p1 = scmp.ne.s32.totalorder %s230_s23, %s628_s9  ;;  %s633_s12 = sshll.u32 %s721_s7, 4  ;;  %s634_s12 = int_to_ptr.vmem [resolvable:$false] %s633_s12 }
  0x5f   : > { %s635_s17 = scalar_lea.vmem %s634_s12, 256  ;;  %p636_p4 = scmp.lt.s32.totalorder %s230_s23, %s634_s12 }
  0x60   : > { %p631_p2 = pnand %p629_p1, %p585_p3  ;;  %p637_p8 = scmp.lt.s32.totalorder %s635_s17, %s628_s9 }
  0x62   : > { %p632_p7 = pneg %p631_p2  ;;  %p638_p9 = por %p637_p8, %p636_p4 }
  0x64   : > { %p639_p12 = pnand %p638_p9, %p632_p7 }
  0x66   : > { %642 = shalt.err (!%p639_p12)
}
  0x67   : > { %507 = dma.hbm_to_vmem [thread:$0]  (!%p865_p11), %s874_s16, 128, %s230_s23, %s219_s11  }
  0x68   : > { %p1029_p6 = scmp.ne.s32.totalorder %s1018_s26, 0 }
  0x69   : > { %s925_s27 = sand.u32 (!%p1029_p6), 1, %s709_s19   ;;  %p1030_p3 = scmp.ne.s32.totalorder (!%p1029_p6), %s1016_s24, 0 }
  0x6a   : > { %238 = sbr.rel (%p1029_p6) target bundleno = 310 (0x136), region = 40  ;;  %s475_s15 = sshll.u32 (!%p1029_p6), %s925_s27, 3 }
  0x6b   : > { %s241_s28 = scalar_lea.sflag (!%p1029_p6), [#allocation3], %s925_s27  ;;  %s244_s8 = scalar_lea.vmem (!%p1029_p6), [#allocation2], %s475_s15 }
  0x71   : > { %688 = dma.done.wait (%p1030_p3), %s241_s28, 128  }
  0x72   : > { %690 = vsyncadd (%p1030_p3), %s241_s28, 4294967168  ;;  %s249_s13 = sand.u32 1, %s776_s22   ;;  %s253_s26 = scalar_lea.vmem [#allocation5], %s475_s15 }
  0x73   : > { %s250_s16 = scalar_lea.sflag [#allocation6], %s249_s13 }
  0x74   : > { %692 = dma.done.wait (%p1030_p3), %s250_s16, 128  }
  0x75   : > { %694 = vsyncadd (%p1030_p3), %s250_s16, 4294967168  ;;  %p1031_p8 = scmp.eq.s32.totalorder %s776_s22, 0 }
  0x77   : > { %696 = dma.done.wait (%p1031_p8), [#allocation6], 128   ;;  %p1032_p11 = pmov %p1031_p8 }
  0x78   : > { %vm292_vm0 = vcmask 261120   ;;  %v291_v0 = vld [vmem:[%s244_s8] sm:$0xff]  ;;  %v325_v1 = vld [vmem:[%s253_s26] sm:$0xff]  ;;  %s478_s11 = sshll.u32 %s925_s27, 4  ;;  %s486_s14 = sshll.u32 %s776_s22, 8 }
  0x79   : > { %698 = vsyncadd (%p1032_p11), [#allocation6], 4294967168  ;;  %v326_v2 = vld [vmem:[#allocation7] sm:$0xff]  ;;  %v293_v3 = vsel %vm292_vm0, %v291_v0, 0.0  ;;  %v298_v4 = vmul.f32 %v291_v0, %v291_v0  ;;  %s288_s2 = scalar_lea.vmem [#allocation8], %s478_s11  ;;  %s958_s17 = scalar_lea.hbm %s1010_s5, %s486_s14 }
  0x7a   : > { %v327_v5 = vadd.f32 %v326_v2, %v325_v1  ;;  %294 = vadd.xlane.f32.xlu0 %v293_v3  ;;  %v479_v28 = vld [vmem:[%s1008_s3] ss:$0 sm:$0xff]  ;;  %s361_s9 = sshll.u32 %s288_s2, 4  ;;  %s348_s15 = scalar_lea.sflag [#allocation4], %s925_s27  ;;  %s960_s9 = int_to_ptr.vmem [resolvable:$true] %s361_s9 }
  0x7b   : > { %v299_v6 = vsel %vm292_vm0, %v298_v4, 0.0  ;;  %v480_v30 = vld [vmem:[%s1009_s4] ss:$0 sm:$0xff]  ;;  %s643_s22 = scalar_lea.vmem %s960_s9, 256  ;;  %p1033_p0 = scmp.ne.s32.totalorder %s1026_s30, 0 }
  0x7c   : > { %v328_v7 = vsel %vm292_vm0, %v327_v5, 0.0  ;;  %v332_v8 = vmul.f32 %v327_v5, %v327_v5  ;;  %300 = vadd.xlane.f32.xlu1 %v299_v6  ;;  %p644_p13 = scmp.ne.s32.totalorder %s960_s9, %s643_s22  ;;  %s722_s28 = smov [#allocation8]  }
  0x7d   : > { %s647_s8 = sshll.u32 %s722_s28, 4  ;;  %s648_s8 = int_to_ptr.vmem [resolvable:$false] %s647_s8 }
  0x7e   : > { %v333_v9 = vsel %vm292_vm0, %v332_v8, 0.0  ;;  %329 = vadd.xlane.f32.xlu0 %v328_v7  ;;  %p645_p5 = pnand %p644_p13, %p1033_p0  ;;  %s649_s13 = scalar_lea.vmem %s648_s8, 512 }
  0x7f   : > { %p650_p1 = scmp.lt.s32.totalorder %s960_s9, %s648_s8  ;;  %p651_p2 = scmp.lt.s32.totalorder %s649_s13, %s643_s22 }
  0x80   : > { %334 = vadd.xlane.f32.xlu1 %v333_v9  ;;  %p646_p10 = pneg %p645_p5 }
  0x81   : > { %p652_p7 = por %p651_p2, %p650_p1 }
  0x83   : > { %p653_p4 = pnand %p652_p7, %p646_p10 }
 0x107   : > { %v295_v10 = vpop.xlane.xlu0 %294 }
 0x108   : > { %v297_v11 = vmul.f32 0.03125, %v295_v10 }
 0x109   : > { %v301_v12 = vpop.xlane.xlu1 %300 }
 0x10a   : > { %v303_v13 = vmul.f32 %v297_v11, %v297_v11  ;;  %v302_v14 = vmul.f32 0.03125, %v301_v12  ;;  %v308_v26 = vsub.f32 %v291_v0, %v297_v11 }
 0x10b   : > { %v330_v15 = vpop.xlane.xlu0 %329 }
 0x10c   : > { %v304_v16 = vsub.f32 %v302_v14, %v303_v13  ;;  %v331_v17 = vmul.f32 0.03125, %v330_v15 }
 0x10d   : > { %v335_v18 = vpop.xlane.xlu1 %334 }
 0x10e   : > { %v305_v19 = vmax.f32 %v304_v16, 0.0  ;;  %v337_v20 = vmul.f32 %v331_v17, %v331_v17  ;;  %v336_v21 = vmul.f32 0.03125, %v335_v18  ;;  %v342_v32 = vsub.f32 %v327_v5, %v331_v17 }
 0x110   : > { %v306_v22 = vadd.f32 1e-12, %v305_v19  ;;  %v338_v23 = vsub.f32 %v336_v21, %v337_v20 }
 0x112   : > { %551 = vrsqrt.f32 %v306_v22  ;;  %v339_v24 = vmax.f32 %v338_v23, 0.0 }
 0x114   : > { %v340_v25 = vadd.f32 1e-12, %v339_v24 }
 0x116   : > { %553 = vrsqrt.f32 %v340_v25 }
 0x11c   : > { %v552_v27 = vpop.eup %551 }
 0x11d   : > { %v309_v29 = vmul.f32 %v552_v27, %v308_v26 }
 0x11f   : > { %v316_v31 = vmul.f32 %v479_v28, %v309_v29 }
 0x120   : > { %v554_v33 = vpop.eup %553 }
 0x121   : > { %v323_v34 = vadd.f32 %v480_v30, %v316_v31  ;;  %v343_v35 = vmul.f32 %v554_v33, %v342_v32 }
 0x123   : > { %v344_v36 = vmul.f32 %v479_v28, %v343_v35  ;;  %324 = vst.msk [vmem:[%s288_s2] sm:$0xff] %vm292_vm0, %v323_v34 }
 0x125   : > { %v345_v37 = vadd.f32 %v480_v30, %v344_v36 }
 0x127   : > { %346 = vst.msk [vmem:[%s288_s2 + $0x8] sm:$0xff] %vm292_vm0, %v345_v37 }
 0x128   : > { %656 = shalt.err (!%p653_p4)
}
 0x129   : > { %s657_s16 = scalar_lea.hbm %s958_s17, 256  ;;  %s661_s23 = scalar_lea.hbm %s1010_s5, 512 }
 0x12a   : > { %p658_p9 = scmp.ne.s32.totalorder %s958_s17, %s657_s16  ;;  %p662_p3 = scmp.lt.u32.totalorder %s958_s17, %s1010_s5 }
 0x12b   : > { %p663_p8 = scmp.lt.u32.totalorder %s661_s23, %s657_s16  ;;  %p665_p13 = scmp.lt.u32.totalorder %s657_s16, %s958_s17 }
 0x12c   : > { %p659_p12 = pnand %p658_p9, %p1033_p0 }
 0x12d   : > { %p664_p11 = por %p663_p8, %p662_p3 }
 0x12e   : > { %p660_p6 = pneg %p659_p12 }
 0x12f   : > { %p666_p5 = por %p665_p13, %p664_p11 }
 0x131   : > { %p667_p10 = pnand %p666_p5, %p660_p6 }
 0x133   : > { %670 = shalt.err (!%p667_p10)
}
 0x134   : > { %s723_s10 = smov 128   ;;  %s724_s14 = smov 8  }
 0x135   : > { %495 = dma.vmem_to_hbm [thread:$0]  (%p1033_p0), %s960_s9, 256, %s958_s17, %s348_s15, %s723_s10, %s723_s10, %s724_s14  }
 0x136 PF: > { %s376_s2 = sand.u32 1, %s705_s18   ;;  %p1034_p1 = scmp.ne.s32.totalorder %s1017_s25, 0 }
 0x137   : > { %p1035_p2 = scmp.ge.s32.totalorder %s717_s21, 2  ;;  %s377_s7 = scalar_lea.sflag [#allocation4], %s376_s2 }
 0x139   : > { %p509_p7 = pnand %p1035_p2, %p1034_p1 }
 0x13b   : > { %700 = dma.done.wait (!%p509_p7), %s377_s7, 256  }
 0x13c   : > { %702 = vsyncadd (!%p509_p7), %s377_s7, 4294967040  ;;  %s1036_s12 = sld [smem:[#allocation13_spill]]  ;;  %p21_p4 = scmp.ge.s32.totalorder %s803_s29, 4  }
 0x13d   : > { %s1037_s18 = smov %s709_s19  ;;  %s1038_s19 = smov %s713_s20 }
 0x13e   : > { %s1040_s21 = smov %s803_s29  ;;  %23 = sbr.rel (!%p21_p4) target bundleno = 9 (0x9), region = 102 }
 0x142   : > { %s1039_s20 = smov %s1036_s12 }
 0x145   :  { %382 = vsyncpa [#allocation3], 1 }
 0x146   :  { %384 = vsyncpa [#allocation3 + $0x1], 1 }
 0x147   :  { %385 = vsyncpa [#allocation6], 1 }
 0x148   :  { %387 = vsyncpa [#allocation6 + $0x1], 1 }
 0x149   :  { %388 = vsyncpa [#allocation4], 1 }
 0x14a   :  { %390 = vsyncpa [#allocation4 + $0x1], 1 }

</bundles_post_ra>
